<compile_context>
chip_gen: v7x
topology: tpu7x:2x2x1
jax: 0.10.0
libtpu: 0.0.40
codegen_flags: <defaults>
</compile_context>

<pallas_src>
import jax
import jax.numpy as jnp
from jax.experimental import pallas as pl
from jax.experimental.pallas import tpu as pltpu


def _round_up(x, m):
    return (x + m - 1) // m * m


def _mlp_kernel(x_ref, w1_ref, b1_ref, w2_ref, b2_ref, o_ref):
    # First linear layer on the MXU (f32 accumulation).
    h = jnp.dot(x_ref[...], w1_ref[...], preferred_element_type=jnp.float32)
    h = h + b1_ref[...]                       # (TB, Hp) + (1, Hp) broadcast
    # Sigmoid: exp on the EUP, approximate reciprocal also on the EUP
    # (frees the VPU divide; exp(-h)=inf for very negative h still gives 0).
    e = jnp.exp(-h)
    h = pl.reciprocal(1.0 + e, approx=True)
    # Second linear layer (K = Hp = multiple of 128 -> decent MXU fill).
    y = jnp.dot(h, w2_ref[...], preferred_element_type=jnp.float32)
    y = y + b2_ref[...]                       # (TB, Op) + (1, Op) broadcast
    o_ref[...] = y.astype(o_ref.dtype)


def mlp_forward(x, w1, b1, w2, b2, *, batch_tile=None):
    """x: (B, in)  w1: (in, H)  b1: (1, H)  w2: (H, out)  b2: (1, out)."""
    B, in_dim = x.shape
    in_w1, H = w1.shape
    H_w2, out_dim = w2.shape
    assert in_w1 == in_dim and H_w2 == H

    # ---- batch tile: multiple of 8 sublanes, >=2 grid steps when B allows
    #      (pipelining + dual-TC megacore), capped at 512 rows to amortize the
    #      ~0.35us per-grid-step overhead without blowing VMEM.
    if batch_tile is None:
        tb = min(512, _round_up(max(B // 2, 1), 8))
    else:
        tb = _round_up(batch_tile, 8)
    B_pad = _round_up(B, tb)

    # ---- lane-dense feature padding (multiples of 128 lanes).
    H_pad = _round_up(H, 128)
    out_pad = _round_up(out_dim, 128)

    xp = jnp.pad(x, ((0, B_pad - B), (0, 0)))
    w1p = jnp.pad(w1, ((0, 0), (0, H_pad - H)))
    b1p = jnp.pad(b1.reshape(1, H), ((0, 0), (0, H_pad - H)))
    w2p = jnp.pad(w2, ((0, H_pad - H), (0, out_pad - out_dim)))
    b2p = jnp.pad(b2.reshape(1, out_dim), ((0, 0), (0, out_pad - out_dim)))

    grid = (B_pad // tb,)

    # Advisory cost hint for the XLA scheduler.
    flops = 2 * B_pad * (in_dim * H_pad + H_pad * out_pad)
    bytes_accessed = 4 * (B_pad * in_dim + in_dim * H_pad + H_pad
                          + H_pad * out_pad + out_pad + B_pad * out_pad)
    cost = pl.CostEstimate(flops=flops,
                           transcendentals=B_pad * H_pad,
                           bytes_accessed=bytes_accessed)

    out = pl.pallas_call(
        _mlp_kernel,
        out_shape=jax.ShapeDtypeStruct((B_pad, out_pad), x.dtype),
        grid_spec=pltpu.PrefetchScalarGridSpec(
            num_scalar_prefetch=0,
            grid=grid,
            in_specs=[
                pl.BlockSpec((tb, in_dim), lambda i: (i, 0)),       # x tile
                pl.BlockSpec((in_dim, H_pad), lambda i: (0, 0)),    # W1 (resident)
                pl.BlockSpec((1, H_pad), lambda i: (0, 0)),         # b1 (resident)
                pl.BlockSpec((H_pad, out_pad), lambda i: (0, 0)),   # W2 (resident)
                pl.BlockSpec((1, out_pad), lambda i: (0, 0)),       # b2 (resident)
            ],
            out_specs=pl.BlockSpec((tb, out_pad), lambda i: (i, 0)),
        ),
        compiler_params=pltpu.CompilerParams(
            # Batch tiles are independent -> megacore split on v7x.
            dimension_semantics=("parallel",)),
        cost_estimate=cost,
    )(xp, w1p, b1p, w2p, b2p)

    return out[:B, :out_dim]


# One jitted entry point: pads + kernel + slice fuse and dispatch is cached.
mlp_forward_jit = jax.jit(mlp_forward)


def reference_forward(x, w1, b1, w2, b2):
    h = jax.nn.sigmoid(x @ w1 + b1)
    return h @ w2 + b2


if __name__ == "__main__":
    # Sizes implied by the NEAT genome/config:
    #   input_size  = len(input_keys)
    #   output_size = len(output_keys)
    #   hidden_size = len(genome.nodes) - input_size - output_size
    # Batch chosen so the default tiling gives >=2 grid steps (pipelining /
    # dual-TC on v7x) while staying small.
    batch = 256
    input_size = 4
    hidden_size = 32
    output_size = 2

    key = jax.random.PRNGKey(0)
    kx, kw1, kb1, kw2, kb2 = jax.random.split(key, 5)

    x = jax.random.normal(kx, (batch, input_size), dtype=jnp.float32)

    # Deterministic parameter init (uniform, matching nn.Linear's fan_in bound).
    bound1 = 1.0 / jnp.sqrt(input_size)
    w1 = jax.random.uniform(kw1, (input_size, hidden_size),
                            minval=-bound1, maxval=bound1, dtype=jnp.float32)
    b1 = jax.random.uniform(kb1, (1, hidden_size),
                            minval=-bound1, maxval=bound1, dtype=jnp.float32)
    bound2 = 1.0 / jnp.sqrt(hidden_size)
    w2 = jax.random.uniform(kw2, (hidden_size, output_size),
                            minval=-bound2, maxval=bound2, dtype=jnp.float32)
    b2 = jax.random.uniform(kb2, (1, output_size),
                            minval=-bound2, maxval=bound2, dtype=jnp.float32)

    out = mlp_forward_jit(x, w1, b1, w2, b2)
    out = jax.block_until_ready(out)

    ref = reference_forward(x, w1, b1, w2, b2)
    assert out.shape == (batch, output_size)
    # Tolerance loosened slightly: the EUP approximate reciprocal in the
    # sigmoid trades a few ULPs for a free bundle slot.
    assert jnp.allclose(out, ref, atol=5e-3, rtol=5e-3)

    print("KERNEL_OK")
</pallas_src>

<mosaic_0001>
module attributes {stable_mosaic.version = 11 : i64} {
  func.func @_mlp_kernel(%arg0: i32, %arg1: memref<128x4xf32, #tpu.memory_space<vmem>>, %arg2: memref<4x128xf32, #tpu.memory_space<vmem>>, %arg3: memref<1x128xf32, #tpu.memory_space<vmem>>, %arg4: memref<128x128xf32, #tpu.memory_space<vmem>>, %arg5: memref<1x128xf32, #tpu.memory_space<vmem>>, %arg6: memref<128x128xf32, #tpu.memory_space<vmem>>) attributes {dimension_semantics = [#tpu.dimension_semantics<parallel>], iteration_bounds = array<i64: 2>, scalar_prefetch = 0 : i64, scratch_operands = 0 : i64, tpu.core_type = #tpu.core_type<tc>, window_params = [{transform_indices = @transform_0, window_bounds = array<i64: 128, 4>}, {pipeline_mode = #tpu.pipeline_mode<synchronous>, transform_indices = @transform_1, window_bounds = array<i64: 4, 128>}, {pipeline_mode = #tpu.pipeline_mode<synchronous>, transform_indices = @transform_2, window_bounds = array<i64: 1, 128>}, {pipeline_mode = #tpu.pipeline_mode<synchronous>, transform_indices = @transform_3, window_bounds = array<i64: 128, 128>}, {pipeline_mode = #tpu.pipeline_mode<synchronous>, transform_indices = @transform_4, window_bounds = array<i64: 1, 128>}, {transform_indices = @transform_5, window_bounds = array<i64: 128, 128>}]} {
    %c0 = arith.constant 0 : index
    %c0_0 = arith.constant 0 : index
    %0 = vector.load %arg1[%c0, %c0_0] : memref<128x4xf32, #tpu.memory_space<vmem>>, vector<128x4xf32>
    %c0_1 = arith.constant 0 : index
    %c0_2 = arith.constant 0 : index
    %1 = vector.load %arg2[%c0_1, %c0_2] : memref<4x128xf32, #tpu.memory_space<vmem>>, vector<4x128xf32>
    %cst = arith.constant dense<0.000000e+00> : vector<128x128xf32>
    %2 = tpu.matmul %0, %1, %cst {dimension_numbers = #tpu.dot_dimension_numbers<[1], [0], [0], [1], [0, 0, 1, 1], [], []>} : vector<128x4xf32>, vector<4x128xf32>, vector<128x128xf32> -> vector<128x128xf32>
    %c0_3 = arith.constant 0 : index
    %c0_4 = arith.constant 0 : index
    %3 = vector.load %arg3[%c0_3, %c0_4] : memref<1x128xf32, #tpu.memory_space<vmem>>, vector<1x128xf32>
    %4 = vector.broadcast %3 : vector<1x128xf32> to vector<128x128xf32>
    %5 = arith.addf %2, %4 : vector<128x128xf32>
    %cst_5 = arith.constant 0.000000e+00 : f32
    %6 = vector.broadcast %cst_5 : f32 to vector<128x128xf32>
    %7 = arith.subf %6, %5 : vector<128x128xf32>
    %8 = math.exp %7 : vector<128x128xf32>
    %cst_6 = arith.constant 1.000000e+00 : f32
    %9 = vector.broadcast %cst_6 : f32 to vector<128x128xf32>
    %10 = arith.addf %9, %8 : vector<128x128xf32>
    %11 = tpu.reciprocal %10 {approx = true} : vector<128x128xf32> -> vector<128x128xf32>
    %c0_7 = arith.constant 0 : index
    %c0_8 = arith.constant 0 : index
    %12 = vector.load %arg4[%c0_7, %c0_8] : memref<128x128xf32, #tpu.memory_space<vmem>>, vector<128x128xf32>
    %cst_9 = arith.constant dense<0.000000e+00> : vector<128x128xf32>
    %13 = tpu.matmul %11, %12, %cst_9 {dimension_numbers = #tpu.dot_dimension_numbers<[1], [0], [0], [1], [0, 0, 1, 1], [], []>} : vector<128x128xf32>, vector<128x128xf32>, vector<128x128xf32> -> vector<128x128xf32>
    %c0_10 = arith.constant 0 : index
    %c0_11 = arith.constant 0 : index
    %14 = vector.load %arg5[%c0_10, %c0_11] : memref<1x128xf32, #tpu.memory_space<vmem>>, vector<1x128xf32>
    %15 = vector.broadcast %14 : vector<1x128xf32> to vector<128x128xf32>
    %16 = arith.addf %13, %15 : vector<128x128xf32>
    %c0_12 = arith.constant 0 : index
    %c0_13 = arith.constant 0 : index
    %17 = vector.load %arg6[%c0_12, %c0_13] : memref<128x128xf32, #tpu.memory_space<vmem>>, vector<128x128xf32>
    tpu.vector_store %arg6[%c0_12, %c0_13], %16 {strides = array<i32>} : memref<128x128xf32, #tpu.memory_space<vmem>>, vector<128x128xf32>,
    return
  }
  func.func @transform_0(%arg0: i32) -> (i32, i32) {
    %c0_i32 = arith.constant 0 : i32
    %c0_i32_0 = arith.constant 0 : i32
    return %arg0, %c0_i32 : i32, i32
  }
  func.func @transform_1(%arg0: i32) -> (i32, i32) {
    %c0_i32 = arith.constant 0 : i32
    %c0_i32_0 = arith.constant 0 : i32
    %c0_i32_1 = arith.constant 0 : i32
    return %c0_i32, %c0_i32_0 : i32, i32
  }
  func.func @transform_2(%arg0: i32) -> (i32, i32) {
    %c0_i32 = arith.constant 0 : i32
    %c0_i32_0 = arith.constant 0 : i32
    %c0_i32_1 = arith.constant 0 : i32
    return %c0_i32, %c0_i32_0 : i32, i32
  }
  func.func @transform_3(%arg0: i32) -> (i32, i32) {
    %c0_i32 = arith.constant 0 : i32
    %c0_i32_0 = arith.constant 0 : i32
    %c0_i32_1 = arith.constant 0 : i32
    return %c0_i32, %c0_i32_0 : i32, i32
  }
  func.func @transform_4(%arg0: i32) -> (i32, i32) {
    %c0_i32 = arith.constant 0 : i32
    %c0_i32_0 = arith.constant 0 : i32
    %c0_i32_1 = arith.constant 0 : i32
    return %c0_i32, %c0_i32_0 : i32, i32
  }
  func.func @transform_5(%arg0: i32) -> (i32, i32) {
    %c0_i32 = arith.constant 0 : i32
    %c0_i32_0 = arith.constant 0 : i32
    return %arg0, %c0_i32 : i32, i32
  }
}

</mosaic_0001>

<bundles_post_ra>
// kernel: mlp_forward.1
= control target key start
LH: loop header
LB: loop body
LE: loop exit
PB: predicated region body
PF: predicated region fallthrough
CT: control target
= control target key end

     0   :  { %s1089_s18 = smov 0   ;;  %s1240_s0 = inlined_call_operand.vmem [shape: f32[256,4], index: 0, kind: input, shape index: {}]   ;;  %s1241_s1 = inlined_call_operand.vmem [shape: f32[4,128], index: 1, kind: input, shape index: {}]   ;;  %s1242_s2 = inlined_call_operand.vmem [shape: f32[1,128], index: 2, kind: input, shape index: {}]   ;;  %s1243_s3 = inlined_call_operand.vmem [shape: f32[128,128], index: 3, kind: input, shape index: {}]   ;;  %s1244_s4 = inlined_call_operand.vmem [shape: f32[1,128], index: 4, kind: input, shape index: {}]   ;;  %s1245_s5 = inlined_call_operand.vmem [shape: f32[256,128], index: 5, kind: output, shape index: {}]  }
   0x1 LB: > { %s770_s19 = sadd.s32 4294967295, %s1057_s18   ;;  %p774_p0 = scmp.ge.s32.totalorder %s1057_s18, 1  ;;  %s1057_s18 = sphi %s1089_s18, %s15_s18  }
   0x2   : > { %p188_p1 = scmp.lt.s32.totalorder %s1057_s18, 3 }
   0x4   : > { %p189_p2 = pnand %p774_p0, %p188_p1 }
   0x5   : > { %v244_v0 = vld [vmem:[%s1241_s1] sm:$0xf] (!%p189_p2)  ;;  %vm301_vm0 = vcmask (!%p189_p2), 1043456   ;;  %s775_s22 = sshll.u32 (!%p189_p2), %s770_s19, 4  ;;  %vm252_vm1 = vcmask (!%p189_p2), 31744   ;;  %v531_v18 = vld [vmem:[%s1243_s3 + $0x8] sm:$0xff] (!%p189_p2) }
   0x6   : > { %192 = sbr.rel (%p189_p2) target bundleno = 510 (0x1fe), region = 40  ;;  %849 = vmatprep.subr.msk.mxu0 (!%p189_p2), %vm301_vm0, %v244_v0  ;;  %p217_p3 = scmp.lt.s32.totalorder (!%p189_p2), %s775_s22, 31  ;;  %v530_v17 = vld [vmem:[%s1243_s3] sm:$0xff] (!%p189_p2)  ;;  %v532_v20 = vld [vmem:[%s1243_s3 + $0x10] sm:$0xff] (!%p189_p2)  ;;  %v533_v21 = vld [vmem:[%s1243_s3 + $0x18] sm:$0xff] (!%p189_p2) }
   0x7   : > { %850 = vmatpush3.msk.msra.mxu0 (!%p189_p2), %vm301_vm0, %v244_v0  ;;  %v931_v19 = vpack.c.bf16 (!%p189_p2), %v531_v18, %v530_v17  ;;  %v935_v22 = vpack.c.bf16 (!%p189_p2), %v533_v21, %v532_v20  ;;  %v534_v23 = vld [vmem:[%s1243_s3 + $0x20] sm:$0xff] (!%p189_p2)  ;;  %v535_v24 = vld [vmem:[%s1243_s3 + $0x28] sm:$0xff] (!%p189_p2)  ;;  %v536_v26 = vld [vmem:[%s1243_s3 + $0x30] sm:$0xff] (!%p189_p2) }
   0x8   : > { %v939_v25 = vpack.c.bf16 (!%p189_p2), %v535_v24, %v534_v23  ;;  %v537_v27 = vld [vmem:[%s1243_s3 + $0x38] sm:$0xff] (!%p189_p2)  ;;  %v538_v29 = vld [vmem:[%s1243_s3 + $0x40] sm:$0xff] (!%p189_p2)  ;;  %v539_v30 = vld [vmem:[%s1243_s3 + $0x48] sm:$0xff] (!%p189_p2) }
   0x9   : > { %932 = vmatprep.subr.bf16.mxu0 (!%p189_p2), %v931_v19  ;;  %963 = vmatprep.subr.bf16.mxu1 (!%p189_p2), %v931_v19  ;;  %v943_v28 = vpack.c.bf16 (!%p189_p2), %v537_v27, %v536_v26  ;;  %v947_v31 = vpack.c.bf16 (!%p189_p2), %v539_v30, %v538_v29  ;;  %v540_v32 = vld [vmem:[%s1243_s3 + $0x50] sm:$0xff] (!%p189_p2)  ;;  %v541_v33 = vld [vmem:[%s1243_s3 + $0x58] sm:$0xff] (!%p189_p2)  ;;  %v542_v35 = vld [vmem:[%s1243_s3 + $0x60] sm:$0xff] (!%p189_p2) }
   0xa   : > { %971 = vmatpush3.bf16.msra.mxu1 (!%p189_p2), %v931_v19  ;;  %v951_v34 = vpack.c.bf16 (!%p189_p2), %v541_v33, %v540_v32  ;;  %v543_v36 = vld [vmem:[%s1243_s3 + $0x68] sm:$0xff] (!%p189_p2)  ;;  %v544_v38 = vld [vmem:[%s1243_s3 + $0x70] sm:$0xff] (!%p189_p2)  ;;  %v545_v39 = vld [vmem:[%s1243_s3 + $0x78] sm:$0xff] (!%p189_p2) }
   0xb   : > { %964 = vmatprep.subr.bf16.mxu1 (!%p189_p2), %v935_v22  ;;  %v955_v37 = vpack.c.bf16 (!%p189_p2), %v543_v36, %v542_v35  ;;  %v959_v40 = vpack.c.bf16 (!%p189_p2), %v545_v39, %v544_v38  ;;  %v1193_v41 = vld [vmem:[%s1242_s2] ss:$0 sm:$0xff] (!%p189_p2) }
   0xd   : > { %s1247_s22 = smov (!%p217_p3, %s775_s22), 31 }
   0xe   : > { %s776_s23 = sshll.u32 %s1247_s22, 3  ;;  %972 = vmatpush3.bf16.msra.mxu1 %v935_v22 }
   0xf   : > { %s1108_s26 = scalar_lea.vmem %s1240_s0, %s776_s23  ;;  %965 = vmatprep.subr.bf16.mxu1 %v939_v25  ;;  %s1219_s19 = scalar_lea.vmem %s1245_s5, %s776_s23 }
  0x10   : > { %v228_v1 = vld [vmem:[%s1108_s26] sm:$0xff]  ;;  %v229_v2 = vld [vmem:[%s1108_s26 + $0x8] sm:$0xff]  ;;  %v230_v3 = vld [vmem:[%s1108_s26 + $0x10] sm:$0xff] }
  0x11   : > { %851 = vmatprep.mubr.msk.f32.mxu0 %vm252_vm1, %v228_v1  ;;  %v231_v4 = vld [vmem:[%s1108_s26 + $0x18] sm:$0xff]  ;;  %v232_v5 = vld [vmem:[%s1108_s26 + $0x20] sm:$0xff]  ;;  %v233_v6 = vld [vmem:[%s1108_s26 + $0x28] sm:$0xff] }
  0x12   : > { %852 = vmatmul.mubr.msk.f32.vlgmr.msra.gmra.mrb[0].mxu0 %vm252_vm1, %v229_v2  ;;  %v234_v7 = vld [vmem:[%s1108_s26 + $0x30] sm:$0xff]  ;;  %v235_v8 = vld [vmem:[%s1108_s26 + $0x38] sm:$0xff]  ;;  %v236_v9 = vld [vmem:[%s1108_s26 + $0x40] sm:$0xff]  ;;  %973 = vmatpush3.bf16.msra.mxu1 %v939_v25 }
  0x13   : > { %854 = vmatprep.mubr.msk.f32.mxu0 %vm252_vm1, %v230_v3  ;;  %v237_v10 = vld [vmem:[%s1108_s26 + $0x48] sm:$0xff]  ;;  %v238_v11 = vld [vmem:[%s1108_s26 + $0x50] sm:$0xff]  ;;  %v239_v12 = vld [vmem:[%s1108_s26 + $0x58] sm:$0xff]  ;;  %934 = vmatpush3.bf16.msra.mxu0 %v931_v19 }
  0x14   : > { %v240_v13 = vld [vmem:[%s1108_s26 + $0x60] sm:$0xff]  ;;  %v241_v14 = vld [vmem:[%s1108_s26 + $0x68] sm:$0xff]  ;;  %v242_v15 = vld [vmem:[%s1108_s26 + $0x70] sm:$0xff]  ;;  %936 = vmatprep.subr.bf16.mxu0 %v935_v22  ;;  %966 = vmatprep.subr.bf16.mxu1 %v943_v28 }
  0x15   : > { %v243_v16 = vld [vmem:[%s1108_s26 + $0x78] sm:$0xff] }
  0x16   : > { %855 = vmatmul.mubr.msk.f32.gmra.mrb[2].mxu0 %vm252_vm1, %v231_v4  ;;  %974 = vmatpush3.bf16.msra.mxu1 %v943_v28 }
  0x17   : > { %857 = vmatprep.mubr.msk.f32.mxu0 %vm252_vm1, %v232_v5  ;;  %938 = vmatpush3.bf16.msra.mxu0 %v935_v22 }
  0x18   : > { %940 = vmatprep.subr.bf16.mxu0 %v939_v25  ;;  %967 = vmatprep.subr.bf16.mxu1 %v947_v31 }
  0x1a   : > { %858 = vmatmul.mubr.msk.f32.gmra.mrb[4].mxu0 %vm252_vm1, %v233_v6  ;;  %975 = vmatpush3.bf16.msra.mxu1 %v947_v31 }
  0x1b   : > { %860 = vmatprep.mubr.msk.f32.mxu0 %vm252_vm1, %v234_v7  ;;  %942 = vmatpush3.bf16.msra.mxu0 %v939_v25 }
  0x1c   : > { %944 = vmatprep.subr.bf16.mxu0 %v943_v28  ;;  %968 = vmatprep.subr.bf16.mxu1 %v951_v34 }
  0x1e   : > { %861 = vmatmul.mubr.msk.f32.gmra.mrb[6].mxu0 %vm252_vm1, %v235_v8  ;;  %976 = vmatpush3.bf16.msra.mxu1 %v951_v34 }
  0x1f   : > { %863 = vmatprep.mubr.msk.f32.mxu0 %vm252_vm1, %v236_v9  ;;  %946 = vmatpush3.bf16.msra.mxu0 %v943_v28 }
  0x20   : > { %948 = vmatprep.subr.bf16.mxu0 %v947_v31  ;;  %969 = vmatprep.subr.bf16.mxu1 %v955_v37 }
  0x22   : > { %864 = vmatmul.mubr.msk.f32.gmra.mrb[8].mxu0 %vm252_vm1, %v237_v10  ;;  %977 = vmatpush3.bf16.msra.mxu1 %v955_v37 }
  0x23   : > { %866 = vmatprep.mubr.msk.f32.mxu0 %vm252_vm1, %v238_v11  ;;  %950 = vmatpush3.bf16.msra.mxu0 %v947_v31 }
  0x24   : > { %952 = vmatprep.subr.bf16.mxu0 %v951_v34  ;;  %970 = vmatprep.subr.bf16.mxu1 %v959_v40 }
  0x26   : > { %867 = vmatmul.mubr.msk.f32.gmra.mrb[10].mxu0 %vm252_vm1, %v239_v12  ;;  %978 = vmatpush3.bf16.msra.mxu1 %v959_v40 }
  0x27   : > { %869 = vmatprep.mubr.msk.f32.mxu0 %vm252_vm1, %v240_v13  ;;  %954 = vmatpush3.bf16.msra.mxu0 %v951_v34 }
  0x28   : > { %956 = vmatprep.subr.bf16.mxu0 %v955_v37 }
  0x2a   : > { %870 = vmatmul.mubr.msk.f32.gmra.mrb[12].mxu0 %vm252_vm1, %v241_v14 }
  0x2b   : > { %872 = vmatprep.mubr.msk.f32.mxu0 %vm252_vm1, %v242_v15  ;;  %958 = vmatpush3.bf16.msra.mxu0 %v955_v37 }
  0x2c   : > { %960 = vmatprep.subr.bf16.mxu0 %v959_v40 }
  0x2e   : > { %873 = vmatmul.mubr.msk.f32.gmra.mrb[14].mxu0 %vm252_vm1, %v243_v16 }
  0x2f   : > { %962 = vmatpush3.bf16.msra.mxu0 %v959_v40 }
  0xe5   : > { %v853_v42 = vpop.f32.mrb[0].mxu0 }
  0xe6   : > { %v377_v43 = vadd.f32 %v853_v42, %v1193_v41  ;;  %v371_v44 = vpop.f32.mrb[1].mxu0 }
  0xe7   : > { %v372_v45 = vadd.f32 %v1193_v41, %v371_v44 }
  0xe8   : > { %v451_v46 = vsub.f32 0.0, %v377_v43 }
  0xe9   : > { %v450_v47 = vsub.f32 0.0, %v372_v45  ;;  %v856_v48 = vpop.f32.mrb[2].mxu0 }
  0xea   : > { %v468_v49 = vmul.f32 1.442695, %v451_v46  ;;  %v387_v50 = vadd.f32 %v856_v48, %v1193_v41  ;;  %v381_v51 = vpop.f32.mrb[3].mxu0 }
  0xeb   : > { %v466_v52 = vmul.f32 1.442695, %v450_v47  ;;  %v382_v53 = vadd.f32 %v1193_v41, %v381_v51 }
  0xec   : > { %987 = vpow2.f32 %v468_v49  ;;  %v453_v54 = vsub.f32 0.0, %v387_v50 }
  0xed   : > { %989 = vpow2.f32 %v466_v52  ;;  %v452_v55 = vsub.f32 0.0, %v382_v53  ;;  %v859_v56 = vpop.f32.mrb[4].mxu0 }
  0xee   : > { %v472_v57 = vmul.f32 1.442695, %v453_v54  ;;  %v397_v58 = vadd.f32 %v859_v56, %v1193_v41  ;;  %v391_v59 = vpop.f32.mrb[5].mxu0 }
  0xef   : > { %v470_v60 = vmul.f32 1.442695, %v452_v55  ;;  %v392_v61 = vadd.f32 %v1193_v41, %v391_v59 }
  0xf0   : > { %991 = vpow2.f32 %v472_v57  ;;  %v455_v62 = vsub.f32 0.0, %v397_v58 }
  0xf1   : > { %993 = vpow2.f32 %v470_v60  ;;  %v454_v63 = vsub.f32 0.0, %v392_v61  ;;  %v862_v0 = vpop.f32.mrb[6].mxu0 }
  0xf2   : > { %v476_v1 = vmul.f32 1.442695, %v455_v62  ;;  %v407_v2 = vadd.f32 %v862_v0, %v1193_v41  ;;  %v401_v3 = vpop.f32.mrb[7].mxu0 }
  0xf3   : > { %v474_v4 = vmul.f32 1.442695, %v454_v63  ;;  %v402_v5 = vadd.f32 %v1193_v41, %v401_v3 }
  0xf4   : > { %995 = vpow2.f32 %v476_v1  ;;  %v457_v6 = vsub.f32 0.0, %v407_v2 }
  0xf5   : > { %997 = vpow2.f32 %v474_v4  ;;  %v456_v7 = vsub.f32 0.0, %v402_v5  ;;  %v865_v8 = vpop.f32.mrb[8].mxu0 }
  0xf6   : > { %v988_v9 = vpop.eup %987  ;;  %v480_v10 = vmul.f32 1.442695, %v457_v6  ;;  %v417_v11 = vadd.f32 %v865_v8, %v1193_v41  ;;  %v411_v12 = vpop.f32.mrb[9].mxu0 }
  0xf7   : > { %v990_v13 = vpop.eup %989  ;;  %v499_v14 = vadd.f32 1.0, %v988_v9  ;;  %v478_v15 = vmul.f32 1.442695, %v456_v7  ;;  %v412_v16 = vadd.f32 %v1193_v41, %v411_v12 }
  0xf8   : > { %v498_v17 = vadd.f32 1.0, %v990_v13  ;;  %999 = vpow2.f32 %v480_v10  ;;  %v459_v18 = vsub.f32 0.0, %v417_v11 }
  0xf9   : > { %1001 = vrcp.f32 %v499_v14  ;;  %v458_v19 = vsub.f32 0.0, %v412_v16  ;;  %v868_v20 = vpop.f32.mrb[10].mxu0 }
  0xfa   : > { %v992_v21 = vpop.eup %991  ;;  %1003 = vrcp.f32 %v498_v17  ;;  %v484_v22 = vmul.f32 1.442695, %v459_v18  ;;  %v427_v23 = vadd.f32 %v868_v20, %v1193_v41  ;;  %v421_v24 = vpop.f32.mrb[11].mxu0 }
  0xfb   : > { %v994_v25 = vpop.eup %993  ;;  %v501_v26 = vadd.f32 1.0, %v992_v21  ;;  %1005 = vpow2.f32 %v478_v15  ;;  %v482_v27 = vmul.f32 1.442695, %v458_v19  ;;  %v422_v28 = vadd.f32 %v1193_v41, %v421_v24 }
  0xfc   : > { %v500_v29 = vadd.f32 1.0, %v994_v25  ;;  %1007 = vpow2.f32 %v484_v22  ;;  %v461_v30 = vsub.f32 0.0, %v427_v23 }
  0xfd   : > { %1009 = vrcp.f32 %v501_v26  ;;  %v460_v31 = vsub.f32 0.0, %v422_v28  ;;  %v871_v32 = vpop.f32.mrb[12].mxu0  ;;  %v797_v26 = vld [vmem:[%s1244_s4] ss:$0 sm:$0xff] }
  0xfe   : > { %v996_v33 = vpop.eup %995  ;;  %1011 = vrcp.f32 %v500_v29  ;;  %v488_v34 = vmul.f32 1.442695, %v461_v30  ;;  %v437_v35 = vadd.f32 %v871_v32, %v1193_v41  ;;  %v431_v36 = vpop.f32.mrb[13].mxu0 }
  0xff   : > { %v998_v37 = vpop.eup %997  ;;  %v503_v38 = vadd.f32 1.0, %v996_v33  ;;  %1013 = vpow2.f32 %v482_v27  ;;  %v486_v39 = vmul.f32 1.442695, %v460_v31  ;;  %v432_v40 = vadd.f32 %v1193_v41, %v431_v36 }
 0x100   : > { %v502_v42 = vadd.f32 1.0, %v998_v37  ;;  %1015 = vpow2.f32 %v488_v34  ;;  %v463_v43 = vsub.f32 0.0, %v437_v35 }
 0x101   : > { %1017 = vrcp.f32 %v503_v38  ;;  %v462_v44 = vsub.f32 0.0, %v432_v40  ;;  %v874_v45 = vpop.f32.mrb[14].mxu0 }
 0x102   : > { %v1000_v46 = vpop.eup %999  ;;  %1019 = vrcp.f32 %v502_v42  ;;  %v447_v47 = vadd.f32 %v874_v45, %v1193_v41  ;;  %v441_v48 = vpop.f32.mrb[15].mxu0  ;;  %v492_v50 = vmul.f32 1.442695, %v463_v43 }
 0x103   : > { %v1002_v49 = vpop.eup %1001  ;;  %1021 = vpow2.f32 %v486_v39  ;;  %v490_v51 = vmul.f32 1.442695, %v462_v44  ;;  %v442_v52 = vadd.f32 %v1193_v41, %v441_v48  ;;  %v505_v54 = vadd.f32 1.0, %v1000_v46 }
 0x104   : > { %v1004_v53 = vpop.eup %1003  ;;  %v465_v55 = vsub.f32 0.0, %v447_v47 }
 0x105   : > { %v1006_v56 = vpop.eup %1005  ;;  %v464_v57 = vsub.f32 0.0, %v442_v52  ;;  %907 = vmatprep.mubr.f32.mxu0 %v1004_v53  ;;  %1023 = vpow2.f32 %v490_v51 }
 0x106   : > { %v1008_v58 = vpop.eup %1007  ;;  %v496_v59 = vmul.f32 1.442695, %v465_v55  ;;  %908 = vmatmul.mubr.f32.vlgmr.msra.gmra.mrb[16].mxu0 %v1002_v49  ;;  %1025 = vpow2.f32 %v492_v50  ;;  %v504_v62 = vadd.f32 1.0, %v1006_v56 }
 0x107   : > { %v1010_v60 = vpop.eup %1009  ;;  %v494_v61 = vmul.f32 1.442695, %v464_v57  ;;  %1027 = vrcp.f32 %v505_v54  ;;  %v507_v3 = vadd.f32 1.0, %v1008_v58 }
 0x108   : > { %v1012_v63 = vpop.eup %1011  ;;  %1029 = vpow2.f32 %v496_v59 }
 0x109   : > { %v1014_v0 = vpop.eup %1013  ;;  %910 = vmatprep.mubr.f32.mxu0 %v1012_v63  ;;  %1031 = vpow2.f32 %v494_v61 }
 0x10a   : > { %v1016_v41 = vpop.eup %1015  ;;  %v506_v1 = vadd.f32 1.0, %v1014_v0  ;;  %911 = vmatmul.mubr.f32.gmra.mrb[18].mxu0 %v1010_v60  ;;  %1033 = vrcp.f32 %v504_v62 }
 0x10b   : > { %v1018_v2 = vpop.eup %1017  ;;  %v509_v8 = vadd.f32 1.0, %v1016_v41 }
 0x10c   : > { %v1020_v4 = vpop.eup %1019  ;;  %1035 = vrcp.f32 %v506_v1 }
 0x10d   : > { %v1022_v5 = vpop.eup %1021  ;;  %913 = vmatprep.mubr.f32.mxu0 %v1020_v4  ;;  %1037 = vrcp.f32 %v507_v3 }
 0x10e   : > { %v508_v6 = vadd.f32 1.0, %v1022_v5  ;;  %914 = vmatmul.mubr.f32.gmra.mrb[20].mxu0 %v1018_v2 }
 0x10f   : > { %v1024_v7 = vpop.eup %1023 }
 0x110   : > { %1039 = vrcp.f32 %v508_v6  ;;  %v1026_v9 = vpop.eup %1025  ;;  %v510_v10 = vadd.f32 1.0, %v1024_v7 }
 0x111   : > { %v1028_v11 = vpop.eup %1027  ;;  %v511_v14 = vadd.f32 1.0, %v1026_v9 }
 0x112   : > { %v1030_v12 = vpop.eup %1029  ;;  %1041 = vrcp.f32 %v510_v10 }
 0x113   : > { %v1032_v13 = vpop.eup %1031  ;;  %1043 = vrcp.f32 %v509_v8  ;;  %v513_v18 = vadd.f32 1.0, %v1030_v12 }
 0x114   : > { %v1034_v15 = vpop.eup %1033  ;;  %v512_v16 = vadd.f32 1.0, %v1032_v13 }
 0x115   : > { %916 = vmatprep.mubr.f32.mxu1 %v1034_v15 }
 0x116   : > { %v1036_v17 = vpop.eup %1035  ;;  %1045 = vrcp.f32 %v512_v16  ;;  %917 = vmatmul.mubr.f32.vlgmr.msra.gmra.mrb[0].mxu1 %v1028_v11 }
 0x117   : > { %1047 = vrcp.f32 %v511_v14  ;;  %919 = vmatprep.mubr.f32.mxu1 %v1036_v17  ;;  %v1038_v19 = vpop.eup %1037 }
 0x118   : > { %1049 = vrcp.f32 %v513_v18 }
 0x11a   : > { %v1040_v20 = vpop.eup %1039  ;;  %920 = vmatmul.mubr.f32.gmra.mrb[2].mxu1 %v1038_v19 }
 0x11b   : > { %922 = vmatprep.mubr.f32.mxu1 %v1040_v20 }
 0x11c   : > { %v1042_v21 = vpop.eup %1041 }
 0x11d   : > { %v1044_v22 = vpop.eup %1043 }
 0x11e   : > { %923 = vmatmul.mubr.f32.gmra.mrb[4].mxu1 %v1044_v22 }
 0x11f   : > { %925 = vmatprep.mubr.f32.mxu1 %v1042_v21 }
 0x120   : > { %v1046_v23 = vpop.eup %1045 }
 0x121   : > { %v1048_v24 = vpop.eup %1047 }
 0x122   : > { %926 = vmatmul.mubr.f32.gmra.mrb[6].mxu1 %v1048_v24  ;;  %v1050_v25 = vpop.eup %1049 }
 0x123   : > { %928 = vmatprep.mubr.f32.mxu1 %v1046_v23 }
 0x126   : > { %929 = vmatmul.mubr.f32.gmra.mrb[8].mxu1 %v1050_v25 }
 0x1d9   : > { %v909_v27 = vpop.f32.mrb[16].mxu0 }
 0x1da   : > { %v625_v28 = vadd.f32 %v909_v27, %v797_v26  ;;  %v619_v29 = vpop.f32.mrb[17].mxu0 }
 0x1db   : > { %v620_v30 = vadd.f32 %v797_v26, %v619_v29 }
 0x1dc   : > { %699 = vst [vmem:[%s1219_s19 + $0x8] sm:$0xff] %v625_v28 }
 0x1dd   : > { %698 = vst [vmem:[%s1219_s19] sm:$0xff] %v620_v30  ;;  %v912_v31 = vpop.f32.mrb[18].mxu0 }
 0x1de   : > { %v635_v32 = vadd.f32 %v912_v31, %v797_v26  ;;  %v629_v33 = vpop.f32.mrb[19].mxu0 }
 0x1df   : > { %v630_v34 = vadd.f32 %v797_v26, %v629_v33 }
 0x1e0   : > { %701 = vst [vmem:[%s1219_s19 + $0x18] sm:$0xff] %v635_v32 }
 0x1e1   : > { %700 = vst [vmem:[%s1219_s19 + $0x10] sm:$0xff] %v630_v34  ;;  %v915_v35 = vpop.f32.mrb[20].mxu0 }
 0x1e2   : > { %v645_v36 = vadd.f32 %v915_v35, %v797_v26  ;;  %v639_v37 = vpop.f32.mrb[21].mxu0 }
 0x1e3   : > { %v640_v38 = vadd.f32 %v797_v26, %v639_v37 }
 0x1e4   : > { %703 = vst [vmem:[%s1219_s19 + $0x28] sm:$0xff] %v645_v36 }
 0x1e5   : > { %702 = vst [vmem:[%s1219_s19 + $0x20] sm:$0xff] %v640_v38 }
 0x1e9   : > { %v918_v39 = vpop.f32.mrb[0].mxu1 }
 0x1ea   : > { %v655_v40 = vadd.f32 %v918_v39, %v797_v26  ;;  %v649_v42 = vpop.f32.mrb[1].mxu1 }
 0x1eb   : > { %v650_v43 = vadd.f32 %v797_v26, %v649_v42 }
 0x1ec   : > { %705 = vst [vmem:[%s1219_s19 + $0x38] sm:$0xff] %v655_v40 }
 0x1ed   : > { %704 = vst [vmem:[%s1219_s19 + $0x30] sm:$0xff] %v650_v43  ;;  %v921_v44 = vpop.f32.mrb[2].mxu1 }
 0x1ee   : > { %v665_v45 = vadd.f32 %v921_v44, %v797_v26  ;;  %v659_v46 = vpop.f32.mrb[3].mxu1 }
 0x1ef   : > { %v660_v47 = vadd.f32 %v797_v26, %v659_v46 }
 0x1f0   : > { %707 = vst [vmem:[%s1219_s19 + $0x48] sm:$0xff] %v665_v45 }
 0x1f1   : > { %706 = vst [vmem:[%s1219_s19 + $0x40] sm:$0xff] %v660_v47  ;;  %v924_v48 = vpop.f32.mrb[4].mxu1 }
 0x1f2   : > { %v675_v49 = vadd.f32 %v924_v48, %v797_v26  ;;  %v669_v50 = vpop.f32.mrb[5].mxu1 }
 0x1f3   : > { %v670_v51 = vadd.f32 %v797_v26, %v669_v50 }
 0x1f4   : > { %709 = vst [vmem:[%s1219_s19 + $0x58] sm:$0xff] %v675_v49 }
 0x1f5   : > { %708 = vst [vmem:[%s1219_s19 + $0x50] sm:$0xff] %v670_v51  ;;  %v927_v52 = vpop.f32.mrb[6].mxu1 }
 0x1f6   : > { %v685_v53 = vadd.f32 %v927_v52, %v797_v26  ;;  %v679_v54 = vpop.f32.mrb[7].mxu1 }
 0x1f7   : > { %v680_v55 = vadd.f32 %v797_v26, %v679_v54 }
 0x1f8   : > { %711 = vst [vmem:[%s1219_s19 + $0x68] sm:$0xff] %v685_v53 }
 0x1f9   : > { %710 = vst [vmem:[%s1219_s19 + $0x60] sm:$0xff] %v680_v55  ;;  %v930_v56 = vpop.f32.mrb[8].mxu1 }
 0x1fa   : > { %v695_v57 = vadd.f32 %v930_v56, %v797_v26  ;;  %v689_v58 = vpop.f32.mrb[9].mxu1 }
 0x1fb   : > { %v690_v59 = vadd.f32 %v797_v26, %v689_v58 }
 0x1fc   : > { %713 = vst [vmem:[%s1219_s19 + $0x78] sm:$0xff] %v695_v57 }
 0x1fd   : > { %712 = vst [vmem:[%s1219_s19 + $0x70] sm:$0xff] %v690_v59 }
 0x1fe PF: > { %s15_s18 = sadd.s32 1, %s1057_s18  }
 0x1ff   : > { %p12_p4 = scmp.ge.s32.totalorder %s15_s18, 4  }
 0x201   :  { %14 = sbr.rel (!%p12_p4) target bundleno = 1 (0x1), region = 70 }

</bundles_post_ra>
